<compile_context>
chip_gen: v5e
topology: v5e:2x2
jax: 0.10.0
libtpu: 0.0.40
codegen_flags: <defaults>
</compile_context>

<pallas_src>
import functools

import jax
import jax.numpy as jnp
from jax.experimental import pallas as pl
from jax.experimental.pallas import tpu as pltpu


_LANE = 128
_TM_CAP = 8192                           # lane-tile cap   (review: 2048 -> 8192)
_TC_CAP = 256                            # channel-tile cap (review: 64 -> 256)
_BLOCK_TARGET_BYTES = 2 * 1024 * 1024    # ~2 MiB per x block: near HBM roofline
                                         # on v5e and comfortably inside the
                                         # 2-4 MiB sweet spot on v6e/v7x.
_VMEM_LIMIT_BYTES = 48 * 1024 * 1024     # explicit scoped-VMEM budget: covers
                                         # in/out double buffers + f32 temps,
                                         # stays under v7x's 64 MiB physical.


def _largest_divisor_multiple(dim, quantum, cap):
    """Largest multiple of `quantum` that divides `dim` and is <= cap (or None)."""
    best = None
    t = quantum
    cap = min(dim, cap)
    while t <= cap:
        if dim % t == 0:
            best = t
        t += quantum
    return best


def _pick_tiles(N, C, HW, itemsize):
    """Choose (bn, tc, tm) block extents targeting ~_BLOCK_TARGET_BYTES blocks."""
    budget_elems = max(_LANE, _BLOCK_TARGET_BYTES // itemsize)

    # --- lane (spatial) tile: multiple of 128 whenever HW >= 128 -------------
    if HW <= _LANE:
        tm = HW                                        # full dim: legal block extent
    else:
        tm = min(_TM_CAP, pl.cdiv(HW, _LANE) * _LANE)  # ragged tail masked in-kernel

    # --- channel tile ---------------------------------------------------------
    sub_q = {1: 32, 2: 16}.get(itemsize, 8)            # dtype-aware sublane quantum
    tc_cap = min(_TC_CAP, max(sub_q, budget_elems // tm))
    if C >= 2 * sub_q:
        # keep >= 2 channel tiles so the "parallel" axis can feed both v7x cores
        tc_cap = min(tc_cap, (C // 2 // sub_q) * sub_q)
    tc = _largest_divisor_multiple(C, sub_q, tc_cap)
    if tc is None and sub_q != 8:
        tc = _largest_divisor_multiple(C, 8, tc_cap)
    if tc is None:
        tc = C                                         # full dim: legal block extent

    # --- batch tile: grow the block toward the target when H*W is small ------
    bn_cap = max(1, budget_elems // (tc * tm))
    bn = _largest_divisor_multiple(N, 1, bn_cap) or 1
    return bn, tc, tm


def _bn_relu_kernel(x_ref, g_ref, b_ref, o_ref,
                    sum_ref, sq_ref, scale_ref, shift_ref,
                    *, eps, inv_count, hw, tm, acc_w, needs_mask):
    # grid = (c_tile, phase, n_tile, m_tile); phase 0 = stats, phase 1 = apply.
    p = pl.program_id(1)
    n = pl.program_id(2)
    m = pl.program_id(3)
    first = jnp.logical_and(n == 0, m == 0)

    # --- phase 0: accumulate per-channel lane-wise partial sums (VPU only) ---
    @pl.when(jnp.logical_and(p == 0, first))
    def _():
        sum_ref[...] = jnp.zeros_like(sum_ref)
        sq_ref[...] = jnp.zeros_like(sq_ref)

    @pl.when(p == 0)
    def _():
        x = x_ref[...].astype(jnp.float32)                  # (bn, tc, tm)
        if needs_mask:
            # Ragged last spatial tile: zero the out-of-range lanes (the DMA
            # only fills the valid prefix; the rest of the buffer is stale).
            lane = jax.lax.broadcasted_iota(jnp.int32, x.shape, 2)
            x = jnp.where(lane + m * tm < hw, x, 0.0)
        acc1 = sum_ref[...]                                  # (tc, acc_w)
        acc2 = sq_ref[...]
        for q in range(tm // acc_w):                         # static unroll
            xq = x[:, :, q * acc_w:(q + 1) * acc_w]          # lane-aligned slice
            acc1 = acc1 + jnp.sum(xq, axis=0)                # VPU adds
            acc2 = acc2 + jnp.sum(xq * xq, axis=0)           # VPU mul + adds
        sum_ref[...] = acc1
        sq_ref[...] = acc2

    # --- phase boundary: finalize per-channel scale / shift (O(C) work) ------
    @pl.when(jnp.logical_and(p == 1, first))
    def _():
        total = jnp.sum(sum_ref[...], axis=1, keepdims=True)     # single XLU reduce
        total_sq = jnp.sum(sq_ref[...], axis=1, keepdims=True)
        mean = total * inv_count
        var = total_sq * inv_count - mean * mean                 # biased variance
        inv_std = jax.lax.rsqrt(jnp.maximum(var, 0.0) + eps)
        scale = g_ref[...].astype(jnp.float32) * inv_std
        scale_ref[...] = scale
        shift_ref[...] = b_ref[...].astype(jnp.float32) - mean * scale

    # --- phase 1: y = relu(x * scale_c + shift_c) -----------------------------
    @pl.when(p == 1)
    def _():
        x = x_ref[...].astype(jnp.float32)
        y = x * scale_ref[...] + shift_ref[...]              # (tc,1) broadcasts
        o_ref[...] = jnp.maximum(y, 0.0).astype(o_ref.dtype)


def batchnorm2d_relu(x, gamma, beta, eps=1e-5):
    """x: (N, C, H, W); gamma, beta: (C,). Returns relu(batchnorm(x))."""
    N, C, H, W = x.shape
    HW = H * W
    itemsize = jnp.dtype(x.dtype).itemsize

    x3 = x.reshape(N, C, HW)                     # free view, no transpose / copy
    g2 = gamma.reshape(C, 1).astype(jnp.float32)
    b2 = beta.reshape(C, 1).astype(jnp.float32)

    bn, tc, tm = _pick_tiles(N, C, HW, itemsize)
    acc_w = tm if tm < _LANE else _LANE
    needs_mask = (HW % tm) != 0

    grid = (C // tc, 2, N // bn, pl.cdiv(HW, tm))

    def x_map(c, p, n, m):
        return (n, c, m)

    def out_map(c, p, n, m):
        # Phase 0 pins the (never-written) output window to the block that
        # phase 1 writes first: no stale block is ever flushed at an index
        # change, and no spurious writeback happens at the phase boundary.
        # Even if Pallas ever switched to write-back-every-step, phase 1 would
        # overwrite this block with valid data afterwards.
        return (n * p, c, m * p)

    def param_map(c, p, n, m):
        return (c, 0)

    kernel = functools.partial(
        _bn_relu_kernel, eps=float(eps), inv_count=1.0 / float(N * HW),
        hw=HW, tm=tm, acc_w=acc_w, needs_mask=needs_mask)

    out3 = pl.pallas_call(
        kernel,
        out_shape=jax.ShapeDtypeStruct((N, C, HW), x.dtype),
        grid=grid,
        in_specs=[
            pl.BlockSpec((bn, tc, tm), x_map),
            pl.BlockSpec((tc, 1), param_map),
            pl.BlockSpec((tc, 1), param_map),
        ],
        out_specs=pl.BlockSpec((bn, tc, tm), out_map),
        scratch_shapes=[
            pltpu.VMEM((tc, acc_w), jnp.float32),   # lane-wise partial sums
            pltpu.VMEM((tc, acc_w), jnp.float32),   # lane-wise partial sums of squares
            pltpu.VMEM((tc, 1), jnp.float32),       # scale = gamma * inv_std
            pltpu.VMEM((tc, 1), jnp.float32),       # shift = beta - mean * scale
        ],
        compiler_params=pltpu.CompilerParams(
            dimension_semantics=("parallel", "arbitrary", "arbitrary",
                                 "arbitrary"),
            vmem_limit_bytes=_VMEM_LIMIT_BYTES),
    )(x3, g2, b2)

    return out3.reshape(N, C, H, W)


def _reference(x, gamma, beta, eps=1e-5):
    xf = x.astype(jnp.float32)
    mean = jnp.mean(xf, axis=(0, 2, 3), keepdims=True)
    var = jnp.mean((xf - mean) ** 2, axis=(0, 2, 3), keepdims=True)
    y = (xf - mean) / jnp.sqrt(var + eps)
    y = y * gamma.reshape(1, -1, 1, 1) + beta.reshape(1, -1, 1, 1)
    return jnp.maximum(y, 0.0).astype(x.dtype)


if __name__ == "__main__":
    key = jax.random.PRNGKey(0)
    kx, kg, kb = jax.random.split(key, 3)

    N, C, H, W = 2, 4, 16, 16
    x = jax.random.normal(kx, (N, C, H, W), dtype=jnp.float32)
    # PyTorch default affine init is ones/zeros; use nontrivial deterministic
    # values to exercise the affine path.
    gamma = 1.0 + 0.1 * jax.random.normal(kg, (C,), dtype=jnp.float32)
    beta = 0.1 * jax.random.normal(kb, (C,), dtype=jnp.float32)

    out = jax.block_until_ready(batchnorm2d_relu(x, gamma, beta))

    ref = _reference(x, gamma, beta)
    assert out.shape == (N, C, H, W)
    err = jnp.max(jnp.abs(out - ref))
    assert err < 1e-4, f"mismatch vs reference: {err}"

    print("KERNEL_OK")
</pallas_src>

<mosaic_0001>
module attributes {stable_mosaic.version = 11 : i64} {
  func.func @_bn_relu_kernel(%arg0: i32, %arg1: i32, %arg2: i32, %arg3: i32, %arg4: memref<2x4x256xf32, #tpu.memory_space<vmem>>, %arg5: memref<4x1xf32, #tpu.memory_space<vmem>>, %arg6: memref<4x1xf32, #tpu.memory_space<vmem>>, %arg7: memref<2x4x256xf32, #tpu.memory_space<vmem>>, %arg8: memref<4x128xf32, #tpu.memory_space<vmem>>, %arg9: memref<4x128xf32, #tpu.memory_space<vmem>>, %arg10: memref<4x1xf32, #tpu.memory_space<vmem>>, %arg11: memref<4x1xf32, #tpu.memory_space<vmem>>) attributes {dimension_semantics = [#tpu.dimension_semantics<parallel>, #tpu.dimension_semantics<arbitrary>, #tpu.dimension_semantics<arbitrary>, #tpu.dimension_semantics<arbitrary>], iteration_bounds = array<i64: 1, 2, 1, 1>, scalar_prefetch = 0 : i64, scratch_operands = 4 : i64, tpu.core_type = #tpu.core_type<tc>, window_params = [{transform_indices = @transform_0, window_bounds = array<i64: 2, 4, 256>}, {transform_indices = @transform_1, window_bounds = array<i64: 4, 1>}, {transform_indices = @transform_2, window_bounds = array<i64: 4, 1>}, {transform_indices = @transform_3, window_bounds = array<i64: 2, 4, 256>}]} {
    %c0_i32 = arith.constant 0 : i32
    %0 = arith.cmpi eq, %arg2, %c0_i32 : i32
    %c0_i32_0 = arith.constant 0 : i32
    %1 = arith.cmpi eq, %arg3, %c0_i32_0 : i32
    %2 = arith.andi %0, %1 : i1
    %c0_i32_1 = arith.constant 0 : i32
    %3 = arith.cmpi eq, %arg1, %c0_i32_1 : i32
    %4 = arith.andi %3, %2 : i1
    %5 = arith.extui %4 : i1 to i32
    %c0_i32_2 = arith.constant 0 : i32
    %6 = arith.cmpi ne, %5, %c0_i32_2 : i32
    scf.if %6 {
      %cst = arith.constant 0.000000e+00 : f32
      %17 = vector.broadcast %cst : f32 to vector<4x128xf32>
      %c0 = arith.constant 0 : index
      %c0_8 = arith.constant 0 : index
      %18 = vector.load %arg8[%c0, %c0_8] : memref<4x128xf32, #tpu.memory_space<vmem>>, vector<4x128xf32>
      tpu.vector_store %arg8[%c0, %c0_8], %17 {strides = array<i32>} : memref<4x128xf32, #tpu.memory_space<vmem>>, vector<4x128xf32>,
      %cst_9 = arith.constant 0.000000e+00 : f32
      %19 = vector.broadcast %cst_9 : f32 to vector<4x128xf32>
      %c0_10 = arith.constant 0 : index
      %c0_11 = arith.constant 0 : index
      %20 = vector.load %arg9[%c0_10, %c0_11] : memref<4x128xf32, #tpu.memory_space<vmem>>, vector<4x128xf32>
      tpu.vector_store %arg9[%c0_10, %c0_11], %19 {strides = array<i32>} : memref<4x128xf32, #tpu.memory_space<vmem>>, vector<4x128xf32>,
    } else {
    }
    %c0_i32_3 = arith.constant 0 : i32
    %7 = arith.cmpi eq, %arg1, %c0_i32_3 : i32
    %8 = arith.extui %7 : i1 to i32
    %c0_i32_4 = arith.constant 0 : i32
    %9 = arith.cmpi ne, %8, %c0_i32_4 : i32
    scf.if %9 {
      %c0 = arith.constant 0 : index
      %c0_8 = arith.constant 0 : index
      %c0_9 = arith.constant 0 : index
      %17 = vector.load %arg4[%c0, %c0_8, %c0_9] : memref<2x4x256xf32, #tpu.memory_space<vmem>>, vector<2x4x256xf32>
      %c0_10 = arith.constant 0 : index
      %c0_11 = arith.constant 0 : index
      %18 = vector.load %arg8[%c0_10, %c0_11] : memref<4x128xf32, #tpu.memory_space<vmem>>, vector<4x128xf32>
      %c0_12 = arith.constant 0 : index
      %c0_13 = arith.constant 0 : index
      %19 = vector.load %arg9[%c0_12, %c0_13] : memref<4x128xf32, #tpu.memory_space<vmem>>, vector<4x128xf32>
      %20 = vector.extract_strided_slice %17 {offsets = [0, 0, 0], sizes = [2, 4, 128], strides = [1, 1, 1]} : vector<2x4x256xf32> to vector<2x4x128xf32>
      %cst = arith.constant dense<0.000000e+00> : vector<4x128xf32>
      %21 = vector.multi_reduction <add>, %20, %cst [0] : vector<2x4x128xf32> to vector<4x128xf32>
      %22 = arith.addf %18, %21 : vector<4x128xf32>
      %23 = arith.mulf %20, %20 : vector<2x4x128xf32>
      %cst_14 = arith.constant dense<0.000000e+00> : vector<4x128xf32>
      %24 = vector.multi_reduction <add>, %23, %cst_14 [0] : vector<2x4x128xf32> to vector<4x128xf32>
      %25 = arith.addf %19, %24 : vector<4x128xf32>
      %26 = vector.extract_strided_slice %17 {offsets = [0, 0, 128], sizes = [2, 4, 128], strides = [1, 1, 1]} : vector<2x4x256xf32> to vector<2x4x128xf32>
      %cst_15 = arith.constant dense<0.000000e+00> : vector<4x128xf32>
      %27 = vector.multi_reduction <add>, %26, %cst_15 [0] : vector<2x4x128xf32> to vector<4x128xf32>
      %28 = arith.addf %22, %27 : vector<4x128xf32>
      %29 = arith.mulf %26, %26 : vector<2x4x128xf32>
      %cst_16 = arith.constant dense<0.000000e+00> : vector<4x128xf32>
      %30 = vector.multi_reduction <add>, %29, %cst_16 [0] : vector<2x4x128xf32> to vector<4x128xf32>
      %31 = arith.addf %25, %30 : vector<4x128xf32>
      %c0_17 = arith.constant 0 : index
      %c0_18 = arith.constant 0 : index
      %32 = vector.load %arg8[%c0_17, %c0_18] : memref<4x128xf32, #tpu.memory_space<vmem>>, vector<4x128xf32>
      tpu.vector_store %arg8[%c0_17, %c0_18], %28 {strides = array<i32>} : memref<4x128xf32, #tpu.memory_space<vmem>>, vector<4x128xf32>,
      %c0_19 = arith.constant 0 : index
      %c0_20 = arith.constant 0 : index
      %33 = vector.load %arg9[%c0_19, %c0_20] : memref<4x128xf32, #tpu.memory_space<vmem>>, vector<4x128xf32>
      tpu.vector_store %arg9[%c0_19, %c0_20], %31 {strides = array<i32>} : memref<4x128xf32, #tpu.memory_space<vmem>>, vector<4x128xf32>,
    } else {
    }
    %c1_i32 = arith.constant 1 : i32
    %10 = arith.cmpi eq, %arg1, %c1_i32 : i32
    %11 = arith.andi %10, %2 : i1
    %12 = arith.extui %11 : i1 to i32
    %c0_i32_5 = arith.constant 0 : i32
    %13 = arith.cmpi ne, %12, %c0_i32_5 : i32
    scf.if %13 {
      %c0 = arith.constant 0 : index
      %c0_8 = arith.constant 0 : index
      %17 = vector.load %arg8[%c0, %c0_8] : memref<4x128xf32, #tpu.memory_space<vmem>>, vector<4x128xf32>
      %cst = arith.constant dense<0.000000e+00> : vector<4xf32>
      %18 = vector.multi_reduction <add>, %17, %cst [1] : vector<4x128xf32> to vector<4xf32>
      %19 = vector.shape_cast %18 : vector<4xf32> to vector<4x1xf32>
      %c0_9 = arith.constant 0 : index
      %c0_10 = arith.constant 0 : index
      %20 = vector.load %arg9[%c0_9, %c0_10] : memref<4x128xf32, #tpu.memory_space<vmem>>, vector<4x128xf32>
      %cst_11 = arith.constant dense<0.000000e+00> : vector<4xf32>
      %21 = vector.multi_reduction <add>, %20, %cst_11 [1] : vector<4x128xf32> to vector<4xf32>
      %22 = vector.shape_cast %21 : vector<4xf32> to vector<4x1xf32>
      %cst_12 = arith.constant 0.001953125 : f32
      %23 = vector.broadcast %cst_12 : f32 to vector<4x1xf32>
      %24 = arith.mulf %19, %23 : vector<4x1xf32>
      %cst_13 = arith.constant 0.001953125 : f32
      %25 = vector.broadcast %cst_13 : f32 to vector<4x1xf32>
      %26 = arith.mulf %22, %25 : vector<4x1xf32>
      %27 = arith.mulf %24, %24 : vector<4x1xf32>
      %28 = arith.subf %26, %27 : vector<4x1xf32>
      %cst_14 = arith.constant 0.000000e+00 : f32
      %29 = vector.broadcast %cst_14 : f32 to vector<4x1xf32>
      %30 = arith.maximumf %28, %29 : vector<4x1xf32>
      %cst_15 = arith.constant 9.99999974E-6 : f32
      %31 = vector.broadcast %cst_15 : f32 to vector<4x1xf32>
      %32 = arith.addf %30, %31 : vector<4x1xf32>
      %33 = math.rsqrt %32 : vector<4x1xf32>
      %c0_16 = arith.constant 0 : index
      %c0_17 = arith.constant 0 : index
      %34 = vector.load %arg5[%c0_16, %c0_17] : memref<4x1xf32, #tpu.memory_space<vmem>>, vector<4x1xf32>
      %35 = arith.mulf %34, %33 : vector<4x1xf32>
      %c0_18 = arith.constant 0 : index
      %c0_19 = arith.constant 0 : index
      %36 = vector.load %arg10[%c0_18, %c0_19] : memref<4x1xf32, #tpu.memory_space<vmem>>, vector<4x1xf32>
      tpu.vector_store %arg10[%c0_18, %c0_19], %35 {strides = array<i32>} : memref<4x1xf32, #tpu.memory_space<vmem>>, vector<4x1xf32>,
      %c0_20 = arith.constant 0 : index
      %c0_21 = arith.constant 0 : index
      %37 = vector.load %arg6[%c0_20, %c0_21] : memref<4x1xf32, #tpu.memory_space<vmem>>, vector<4x1xf32>
      %38 = arith.mulf %24, %35 : vector<4x1xf32>
      %39 = arith.subf %37, %38 : vector<4x1xf32>
      %c0_22 = arith.constant 0 : index
      %c0_23 = arith.constant 0 : index
      %40 = vector.load %arg11[%c0_22, %c0_23] : memref<4x1xf32, #tpu.memory_space<vmem>>, vector<4x1xf32>
      tpu.vector_store %arg11[%c0_22, %c0_23], %39 {strides = array<i32>} : memref<4x1xf32, #tpu.memory_space<vmem>>, vector<4x1xf32>,
    } else {
    }
    %c1_i32_6 = arith.constant 1 : i32
    %14 = arith.cmpi eq, %arg1, %c1_i32_6 : i32
    %15 = arith.extui %14 : i1 to i32
    %c0_i32_7 = arith.constant 0 : i32
    %16 = arith.cmpi ne, %15, %c0_i32_7 : i32
    scf.if %16 {
      %c0 = arith.constant 0 : index
      %c0_8 = arith.constant 0 : index
      %c0_9 = arith.constant 0 : index
      %17 = vector.load %arg4[%c0, %c0_8, %c0_9] : memref<2x4x256xf32, #tpu.memory_space<vmem>>, vector<2x4x256xf32>
      %c0_10 = arith.constant 0 : index
      %c0_11 = arith.constant 0 : index
      %18 = vector.load %arg10[%c0_10, %c0_11] : memref<4x1xf32, #tpu.memory_space<vmem>>, vector<4x1xf32>
      %19 = vector.shape_cast %18 : vector<4x1xf32> to vector<1x4x1xf32>
      %20 = vector.broadcast %19 : vector<1x4x1xf32> to vector<2x4x256xf32>
      %21 = arith.mulf %17, %20 : vector<2x4x256xf32>
      %c0_12 = arith.constant 0 : index
      %c0_13 = arith.constant 0 : index
      %22 = vector.load %arg11[%c0_12, %c0_13] : memref<4x1xf32, #tpu.memory_space<vmem>>, vector<4x1xf32>
      %23 = vector.shape_cast %22 : vector<4x1xf32> to vector<1x4x1xf32>
      %24 = vector.broadcast %23 : vector<1x4x1xf32> to vector<2x4x256xf32>
      %25 = arith.addf %21, %24 : vector<2x4x256xf32>
      %cst = arith.constant 0.000000e+00 : f32
      %26 = vector.broadcast %cst : f32 to vector<2x4x256xf32>
      %27 = arith.maximumf %25, %26 : vector<2x4x256xf32>
      %c0_14 = arith.constant 0 : index
      %c0_15 = arith.constant 0 : index
      %c0_16 = arith.constant 0 : index
      %28 = vector.load %arg7[%c0_14, %c0_15, %c0_16] : memref<2x4x256xf32, #tpu.memory_space<vmem>>, vector<2x4x256xf32>
      tpu.vector_store %arg7[%c0_14, %c0_15, %c0_16], %27 {strides = array<i32>} : memref<2x4x256xf32, #tpu.memory_space<vmem>>, vector<2x4x256xf32>,
    } else {
    }
    return
  }
  func.func @transform_0(%arg0: i32, %arg1: i32, %arg2: i32, %arg3: i32) -> (i32, i32, i32) {
    %c0_i32 = arith.constant 0 : i32
    return %arg2, %arg0, %arg3 : i32, i32, i32
  }
  func.func @transform_1(%arg0: i32, %arg1: i32, %arg2: i32, %arg3: i32) -> (i32, i32) {
    %c0_i32 = arith.constant 0 : i32
    %c0_i32_0 = arith.constant 0 : i32
    return %arg0, %c0_i32 : i32, i32
  }
  func.func @transform_2(%arg0: i32, %arg1: i32, %arg2: i32, %arg3: i32) -> (i32, i32) {
    %c0_i32 = arith.constant 0 : i32
    %c0_i32_0 = arith.constant 0 : i32
    return %arg0, %c0_i32 : i32, i32
  }
  func.func @transform_3(%arg0: i32, %arg1: i32, %arg2: i32, %arg3: i32) -> (i32, i32, i32) {
    %0 = arith.muli %arg2, %arg1 : i32
    %1 = arith.muli %arg3, %arg1 : i32
    %c0_i32 = arith.constant 0 : i32
    return %0, %arg0, %1 : i32, i32, i32
  }
}

</mosaic_0001>

<bundles_post_ra>
// kernel: tpu_custom_call.1
= control target key start
LH: loop header
LB: loop body
LE: loop exit
PB: predicated region body
PF: predicated region fallthrough
CT: control target
= control target key end

     0   :  { %8 = vsyncpa [#allocation7], 0  ;;  %s789_s0 = inlined_call_operand.hbm [shape: f32[2,4,256], index: 0, kind: input, shape index: {}]   ;;  %s790_s1 = inlined_call_operand.vmem [shape: f32[4,1], index: 1, kind: input, shape index: {}]   ;;  %s791_s2 = inlined_call_operand.vmem [shape: f32[4,1], index: 2, kind: input, shape index: {}]   ;;  %s792_s3 = inlined_call_operand.hbm [shape: f32[2,4,256], index: 3, kind: output, shape index: {}]  }
   0x1   :  { %9 = vsyncpa [#allocation8], 0 }
   0x2   :  { %11 = vsyncpa [#allocation8 + $0x1], 0  ;;  %s717_s12 = smov 0   ;;  %s719_s13 = smov 0  }
   0x3   :  { %s721_s14 = smov 0  }
   0x4 LB: > { %s523_s15 = sadd.s32 4294967295, %s686_s14   ;;  %s524_s16 = sadd.s32 4294967294, %s686_s14   ;;  %s686_s14 = sphi %s721_s14, %s17_s14   ;;  %s682_s13 = sphi %s719_s13, %s795_s13   ;;  %s678_s12 = sphi %s717_s12, %s794_s12  }
   0x5   : > { %s39_s17 = sadd.s32 1, %s682_s13  ;;  %p525_p0 = scmp.ge.s32.totalorder %s686_s14, 1 }
   0x6   : > { %p41_p1 = scmp.ge.s32.totalorder %s39_s17, 2  ;;  %p164_p2 = scmp.lt.s32.totalorder %s686_s14, 3 }
   0x7   : > { %p739_p3 = scmp.eq.s32.totalorder %s523_s15, 0  ;;  %s183_s21 = sshll.u32 %s789_s0, 4  ;;  %s184_s21 = int_to_ptr.hbm [resolvable:$true] %s183_s21 }
   0x8   : > { %s797_s17 = smov (%p41_p1, %s39_s17), 0  ;;  %p165_p4 = pnand %p525_p0, %p164_p2 }
   0x9   : > { %s688_s22 = smov [#allocation6]   ;;  %s689_s24 = smov 128  }
   0xa   : > { %p549_p5 = pneg %p165_p4  ;;  %s185_s23 = sshll.u32 %s688_s22, 4  ;;  %s186_s23 = int_to_ptr.vmem [resolvable:$true] %s185_s23 }
   0xb   : > { %s690_s25 = smov 8   ;;  %215 = sbr.rel (%p165_p4) target bundleno = 356 (0x164), region = 32 }
   0xc   : > { %p550_p6 = pnand %p739_p3, %p549_p5 }
   0xe   : > { %552 = dma.hbm_to_vmem [thread:$0]  (!%p550_p6), %s184_s21, 256, %s186_s23, [#allocation7], %s689_s24, %s689_s24, %s690_s25  }
  0x10   : > { %669 = dma.done.wait (%p739_p3), [#allocation7], 256  }
  0x11   : > { %671 = vsyncadd (%p739_p3), [#allocation7], 4294967040  ;;  %p261_p7 = scmp.eq.s32.totalorder %s678_s12, 0 }
  0x12   : > { %v691_v0 = vmov (%p261_p7), 0.0  }
  0x13   : > { %265 = sbr.rel (!%p261_p7) target bundleno = 24 (0x18), region = 40  ;;  %266 = vst [vmem:[#allocation2] sm:$0xf] (%p261_p7), %v691_v0 }
  0x14   : > { %267 = vst [vmem:[#allocation3] sm:$0xf] (%p261_p7), %v691_v0 }
  0x18 PF: > { %p532_p8 = scmp.ne.s32.totalorder %s678_s12, 0 }
  0x1a   : > { %270 = sbr.rel (%p532_p8) target bundleno = 47 (0x2f), region = 44 }
  0x1f   : > { %v271_v1 = vld [vmem:[#allocation6] sm:$0xff]  ;;  %v272_v2 = vld [vmem:[#allocation6 + $0x8] sm:$0xff]  ;;  %vm275_vm0 = vcmask 1043456   ;;  %v274_v9 = vld [vmem:[#allocation3] sm:$0xf] }
  0x20   : > { %288 = vst [vmem:[#allocation1] ss:$2 sm:$0xff] %v271_v1  ;;  %v280_v3 = vmul.f32 %v271_v1, %v271_v1  ;;  %v281_v4 = vmul.f32 %v272_v2, %v272_v2  ;;  %v276_v5 = vsel %vm275_vm0, %v271_v1, 0.0  ;;  %v277_v6 = vsel %vm275_vm0, %v272_v2, 0.0  ;;  %v273_v16 = vld [vmem:[#allocation2] sm:$0xf] }
  0x21   : > { %291 = vst [vmem:[#allocation1 + $0x10] ss:$2 sm:$0xff] %v272_v2  ;;  %v299_v7 = vrot.slane %v271_v1, 4  ;;  %v300_v8 = vrot.slane %v272_v2, 4  ;;  %v278_v15 = vadd.f32 %v277_v6, %v276_v5 }
  0x22   : > { %v282_v10 = vsel %vm275_vm0, %v280_v3, 0.0  ;;  %v283_v11 = vsel %vm275_vm0, %v281_v4, 0.0 }
  0x23   : > { %v284_v12 = vadd.f32 %v283_v11, %v282_v10  ;;  %v303_v13 = vmul.f32 %v299_v7, %v299_v7  ;;  %v304_v14 = vmul.f32 %v300_v8, %v300_v8  ;;  %v279_v22 = vadd.f32 %v278_v15, %v273_v16 }
  0x25   : > { %v285_v17 = vadd.f32 %v284_v12, %v274_v9  ;;  %v305_v18 = vsel %vm275_vm0, %v303_v13, 0.0  ;;  %v306_v19 = vsel %vm275_vm0, %v304_v14, 0.0 }
  0x26   : > { %v307_v20 = vadd.f32 %v306_v19, %v305_v18 }
  0x27   : > { %v289_v21 = vld.sshfl [vmem:[#allocation1 + $0x8] sm:$0xff pattern:$0x75316420] }
  0x28   : > { %v292_v23 = vld.sshfl [vmem:[#allocation1 + $0x18] sm:$0xff pattern:$0x75316420]  ;;  %v295_v24 = vsel %vm275_vm0, %v289_v21, 0.0  ;;  %v308_v25 = vadd.f32 %v307_v20, %v285_v17 }
  0x29   : > { %v296_v26 = vsel %vm275_vm0, %v292_v23, 0.0 }
  0x2a   : > { %v297_v27 = vadd.f32 %v296_v26, %v295_v24  ;;  %310 = vst [vmem:[#allocation3] sm:$0xf] %v308_v25 }
  0x2c   : > { %v298_v28 = vadd.f32 %v297_v27, %v279_v22 }
  0x2e   : > { %309 = vst [vmem:[#allocation2] sm:$0xf] %v298_v28 }
  0x2f PF: > { %p311_p9 = scmp.eq.s32.totalorder %s678_s12, 1 }
  0x30   : > { %vm317_vm1 = vcmask (%p311_p9), 1043456   ;;  %v341_v46 = vld [vmem:[%s790_s1] sm:$0xf] (%p311_p9)  ;;  %vm343_vm5 = vcmask (%p311_p9), 3072  }
  0x31   : > { %315 = sbr.rel (!%p311_p9) target bundleno = 212 (0xd4), region = 48  ;;  %v321_v31 = vld [vmem:[#allocation3] sm:$0xf] (%p311_p9)  ;;  %v345_v50 = vld [vmem:[%s791_s2] sm:$0xf] (%p311_p9) }
  0x32   : > { %v322_v32 = vsel (%p311_p9), %vm317_vm1, %v321_v31, 0.0 }
  0x35   : > { %v316_v29 = vld [vmem:[#allocation2] sm:$0xf] (%p311_p9) }
  0x36   : > { %v318_v30 = vsel %vm317_vm1, %v316_v29, 0.0 }
  0x37   : > { %319 = vadd.xlane.f32.xlu0 %v318_v30 }
  0x3f   : > { %323 = vadd.xlane.f32.xlu0 %v322_v32 }
  0xaa   : > { %v320_v33 = vpop.xlane.xlu0 %319 }
  0xab   : > { %v325_v34 = vmul.f32 0.001953125, %v320_v33 }
  0xad   : > { %v327_v36 = vmul.f32 %v325_v34, %v325_v34 }
  0xb2   : > { %v324_v35 = vpop.xlane.xlu0 %323 }
  0xb3   : > { %v326_v37 = vmul.f32 0.001953125, %v324_v35 }
  0xb5   : > { %v328_v38 = vsub.f32 %v326_v37, %v327_v36 }
  0xb7   : > { %v329_v39 = vmax.f32 %v328_v38, 0.0 }
  0xb9   : > { %v330_v40 = vadd.f32 1e-05, %v329_v39 }
  0xbb   : > { %595 = vrsqrt.f32 %v330_v40  ;;  %vm337_vm3 = vweird.f32 %v330_v40 }
  0xc1   : > { %v596_v41 = vpop.eup %595 }
  0xc2   : > { %v332_v42 = vmul.f32 %v596_v41, %v330_v40  ;;  %vm338_vm2 = vweird.f32 %v596_v41 }
  0xc3   : > { %vm339_vm4 = vmor %vm337_vm3, %vm338_vm2 }
  0xc4   : > { %v333_v43 = vmul.f32 %v596_v41, %v332_v42 }
  0xc6   : > { %v334_v44 = vmul.f32 0.5, %v333_v43 }
  0xc8   : > { %v335_v45 = vsub.f32 1.5, %v334_v44 }
  0xca   : > { %v336_v47 = vmul.f32 %v596_v41, %v335_v45 }
  0xcc   : > { %v340_v48 = vsel %vm339_vm4, %v596_v41, %v336_v47 }
  0xcd   : > { %v342_v49 = vmul.f32 %v341_v46, %v340_v48 }
  0xcf   : > { %344 = vst.msk [vmem:[#allocation4] sm:$0xf] %vm343_vm5, %v342_v49  ;;  %v346_v51 = vmul.f32 %v342_v49, %v325_v34 }
  0xd1   : > { %v347_v52 = vsub.f32 %v345_v50, %v346_v51 }
  0xd3   : > { %348 = vst.msk [vmem:[#allocation5] sm:$0xf] %vm343_vm5, %v347_v52 }
  0xd4 PF: > { %p534_p10 = scmp.ne.s32.totalorder %s678_s12, 1 }
  0xd6   : > { %351 = sbr.rel (%p534_p10) target bundleno = 352 (0x160), region = 52 }
  0xdb   : > { %v354_v53 = vld [vmem:[#allocation4] sm:$0xf]  ;;  %v692_v54 = vmov 0   ;;  %v366_v55 = vld [vmem:[#allocation5] sm:$0xf]  ;;  %v352_v61 = vld [vmem:[#allocation6] sm:$0xff] }
  0xdc   : > { %597 = vset.pattern.permute.xlu0 %v692_v54  ;;  %v693_v56 = vmov 839922192   ;;  %v353_v62 = vld [vmem:[#allocation6 + $0x8] sm:$0xff] }
  0xdd   : > { %357 = vperm.xlu0 %597, %v354_v53   ;;  %v360_v57 = vunpack.c.l.s4 %v693_v56 }
  0xdf   : > { %v361_v59 = vunpack.c.0.s8 %v360_v57 }
  0xe5   : > { %369 = vperm.xlu0 %597, %v366_v55  }
 0x14f   : > { %v358_v58 = vpop.permute.xlu0 %357 }
 0x150   : > { %v362_v60 = vperm.slane %v358_v58, %v361_v59 }
 0x152   : > { %v364_v0 = vmul.f32 %v362_v60, %v352_v61  ;;  %v365_v1 = vmul.f32 %v362_v60, %v353_v62 }
 0x157   : > { %v370_v63 = vpop.permute.xlu0 %369 }
 0x158   : > { %v374_v2 = vperm.slane %v370_v63, %v361_v59 }
 0x15a   : > { %v376_v3 = vadd.f32 %v374_v2, %v364_v0  ;;  %v377_v4 = vadd.f32 %v374_v2, %v365_v1 }
 0x15c   : > { %v378_v5 = vmax.f32 %v376_v3, 0.0  ;;  %v379_v6 = vmax.f32 %v377_v4, 0.0 }
 0x15e   : > { %380 = vst [vmem:[#allocation9] sm:$0xff] %v378_v5 }
 0x15f   : > { %381 = vst [vmem:[#allocation9 + $0x8] sm:$0xff] %v379_v6 }
 0x160 PF: > { %p559_p11 = scmp.eq.s32.totalorder %s523_s15, 1  ;;  %s404_s5 = sshll.u32 %s792_s3, 4  ;;  %s405_s5 = int_to_ptr.hbm [resolvable:$true] %s404_s5 }
 0x161   : > { %s694_s6 = smov [#allocation9]   ;;  %s695_s8 = smov 128  }
 0x162   : > { %s402_s7 = sshll.u32 %s694_s6, 4  ;;  %s696_s9 = smov 8   ;;  %s403_s7 = int_to_ptr.vmem [resolvable:$true] %s402_s7 }
 0x163   : > { %546 = dma.vmem_to_hbm [thread:$0]  (%p559_p11), %s403_s7, 256, %s405_s5, [#allocation8], %s695_s8, %s695_s8, %s696_s9  }
 0x164 PF: > { %p560_p12 = scmp.ge.s32.totalorder %s686_s14, 2  ;;  %p561_p13 = scmp.eq.s32.totalorder %s524_s16, 1 }
 0x166   : > { %p554_p0 = pnand %p561_p13, %p560_p12 }
 0x168   : > { %p555_p1 = pneg %p554_p0 }
 0x16a   : > { %673 = dma.done.wait (%p555_p1), [#allocation8], 256  }
 0x16b   : > { %675 = vsyncadd (%p555_p1), [#allocation8], 4294967040  ;;  %s17_s14 = sadd.s32 1, %s686_s14   ;;  %s794_s12 = smov %s682_s13 }
 0x16c   : > { %p14_p2 = scmp.ge.s32.totalorder %s17_s14, 4   ;;  %s795_s13 = smov %s797_s17 }
 0x16e   :  { %16 = sbr.rel (!%p14_p2) target bundleno = 4 (0x4), region = 93 }
 0x173   :  { %426 = vsyncpa [#allocation7], 1 }
 0x174   :  { %428 = vsyncpa [#allocation7 + $0x1], 1 }
 0x175   :  { %429 = vsyncpa [#allocation8], 1 }
 0x176   :  { %431 = vsyncpa [#allocation8 + $0x1], 1 }

</bundles_post_ra>
